<compile_context>
chip_gen: v5e
topology: v5e:2x2
jax: 0.10.0
libtpu: 0.0.40
codegen_flags: <defaults>
</compile_context>

<pallas_src>
import functools

import jax
import jax.numpy as jnp
from jax.experimental import pallas as pl
from jax.experimental.pallas import tpu as pltpu


# ----------------------------------------------------------------------------
# Fused kernel body (one batch element per grid step)
# ----------------------------------------------------------------------------
def _block_body(col1_ref, xres_ref, ring_ref, w1_ref, s1_ref, b1_ref,
                w2_ref, s2_ref, b2_ref, proj, out_ref, col2_ref, *, Wo):
    """col1_ref : (1, 9*Cin, Np)  conv1 im2col on the padded output grid
    xres_ref : (1, Cin, Np)     stride-sampled input (shortcut), padded grid
    ring_ref : (1, Np)          1.0 on interior, 0.0 on the 1-px ring
    w1/w2    : (Cout, 9*Cin) / (Cout, 9*Cout)  matmul-ready conv weights
    s*/b*    : (Cout, 1)        folded BatchNorm scale / shift
    proj     : None or (wsc (Cout,Cin), ssc, bsc) for the 1x1 shortcut
    out_ref  : (1, Cout, Np)    padded-flat NCHW output (ring = don't-care)
    col2_ref : VMEM scratch (9*Cout, Np) — conv2 im2col, fully rewritten."""
    cout = out_ref.shape[1]
    np_ = out_ref.shape[2]
    wp = Wo + 2                        # row stride of the padded flat grid

    # ---- conv1: single MXU matmul (K = 9*Cin) + folded BN1 + ReLU.
    # Zeroing the ring makes it conv2's zero padding.
    h1 = jnp.dot(w1_ref[...], col1_ref[0], preferred_element_type=jnp.float32)
    h1 = jnp.maximum(h1 * s1_ref[...] + b1_ref[...], 0.0) * ring_ref[...]

    # ---- in-kernel im2col for conv2 (3x3, stride 1, pad 1).
    # In the padded-flat layout, tap (kh, kw) is a pure static lane shift by
    # (kh-1)*wp + (kw-1); shifted-in lanes only ever land on ring outputs,
    # which the wrapper crops, so no per-tap masks are needed.
    zpad = jnp.zeros((cout, wp + 1), jnp.float32)
    ext = jnp.concatenate([zpad, h1, zpad], axis=1)      # (Cout, Np + 2*wp + 2)
    for t in range(9):
        kh, kw = divmod(t, 3)
        off = kh * wp + kw                               # = (wp+1) + shift
        col2_ref[t * cout:(t + 1) * cout, :] = ext[:, off:off + np_]

    # ---- conv2: single MXU matmul (K = 9*Cout) + folded BN2.
    h2 = jnp.dot(w2_ref[...], col2_ref[...], preferred_element_type=jnp.float32)
    h2 = h2 * s2_ref[...] + b2_ref[...]

    # ---- shortcut (identity, or 1x1 strided conv + folded BN).
    xres = xres_ref[0].astype(jnp.float32)
    if proj is not None:
        wsc_ref, ssc_ref, bsc_ref = proj
        res = jnp.dot(wsc_ref[...], xres, preferred_element_type=jnp.float32)
        res = res * ssc_ref[...] + bsc_ref[...]
    else:
        res = xres

    out_ref[0] = jnp.maximum(h2 + res, 0.0).astype(out_ref.dtype)


def _kernel_proj(col1_ref, xres_ref, ring_ref, w1_ref, s1_ref, b1_ref,
                 w2_ref, s2_ref, b2_ref, wsc_ref, ssc_ref, bsc_ref,
                 out_ref, col2_ref, *, Wo):
    _block_body(col1_ref, xres_ref, ring_ref, w1_ref, s1_ref, b1_ref,
                w2_ref, s2_ref, b2_ref, (wsc_ref, ssc_ref, bsc_ref),
                out_ref, col2_ref, Wo=Wo)


def _kernel_identity(col1_ref, xres_ref, ring_ref, w1_ref, s1_ref, b1_ref,
                     w2_ref, s2_ref, b2_ref, out_ref, col2_ref, *, Wo):
    _block_body(col1_ref, xres_ref, ring_ref, w1_ref, s1_ref, b1_ref,
                w2_ref, s2_ref, b2_ref, None, out_ref, col2_ref, Wo=Wo)


# ----------------------------------------------------------------------------
# Wrapper-side parameter prep (done once, outside the kernel hot path)
# ----------------------------------------------------------------------------
def _fold_bn(bn, eps=1e-5):
    scale = bn["gamma"] / jnp.sqrt(bn["var"] + eps)
    shift = bn["beta"] - bn["mean"] * scale
    return scale.reshape(-1, 1), shift.reshape(-1, 1)      # (Cout, 1)


def _conv3x3_weight_mat(w):
    # torch OIHW (Cout, Cin, 3, 3) -> (Cout, 9*Cin), tap-major then channel.
    co, ci, kh, kw = w.shape
    return jnp.transpose(w, (0, 2, 3, 1)).reshape(co, kh * kw * ci)


# ----------------------------------------------------------------------------
# Full ResNetBlock forward
# ----------------------------------------------------------------------------
def resnet_block_forward(x_nchw, params, stride):
    B, Cin, H, W = x_nchw.shape
    Cout = params["conv1_w"].shape[0]
    s = int(stride)
    Ho = (H - 1) // s + 1
    Wo = (W - 1) // s + 1
    Hp, Wp = Ho + 2, Wo + 2
    Np = Hp * Wp
    has_proj = (s != 1) or (Cin != Cout)

    # conv1 im2col on the *padded* output grid (NCHW throughout, no transpose).
    x_pad = jnp.pad(x_nchw, ((0, 0), (0, 0), (1, 1), (1, 1)))
    taps = []
    for kh in range(3):
        for kw in range(3):
            taps.append(x_pad[:, :, kh:kh + (Ho - 1) * s + 1:s,
                                    kw:kw + (Wo - 1) * s + 1:s])
    col1 = jnp.concatenate(taps, axis=1)                      # (B, 9*Cin, Ho, Wo)
    col1 = jnp.pad(col1, ((0, 0), (0, 0), (1, 1), (1, 1)))    # add the 1-px ring
    col1 = col1.reshape(B, 9 * Cin, Np)

    # Stride-sampled input for the shortcut, placed on the same padded grid.
    xres = x_nchw[:, :, ::s, ::s][:, :, :Ho, :Wo]
    xres = jnp.pad(xres, ((0, 0), (0, 0), (1, 1), (1, 1))).reshape(B, Cin, Np)

    # Interior mask (1-px ring = 0): makes conv1's output ring the zero padding
    # that conv2 needs.
    ring = jnp.zeros((Hp, Wp), jnp.float32).at[1:-1, 1:-1].set(1.0).reshape(1, Np)

    w1 = _conv3x3_weight_mat(params["conv1_w"])               # (Cout, 9*Cin)
    w2 = _conv3x3_weight_mat(params["conv2_w"])               # (Cout, 9*Cout)
    s1, b1 = _fold_bn(params["bn1"])
    s2, b2 = _fold_bn(params["bn2"])

    inputs = [col1, xres, ring, w1, s1, b1, w2, s2, b2]
    in_specs = [
        pl.BlockSpec((1, 9 * Cin, Np), lambda b: (b, 0, 0)),
        pl.BlockSpec((1, Cin, Np), lambda b: (b, 0, 0)),
        pl.BlockSpec((1, Np), lambda b: (0, 0)),
        pl.BlockSpec((Cout, 9 * Cin), lambda b: (0, 0)),
        pl.BlockSpec((Cout, 1), lambda b: (0, 0)),
        pl.BlockSpec((Cout, 1), lambda b: (0, 0)),
        pl.BlockSpec((Cout, 9 * Cout), lambda b: (0, 0)),
        pl.BlockSpec((Cout, 1), lambda b: (0, 0)),
        pl.BlockSpec((Cout, 1), lambda b: (0, 0)),
    ]
    flops = 2 * B * Np * Cout * (9 * Cin + 9 * Cout)
    bytes_accessed = 4 * (B * 9 * Cin * Np + B * Cin * Np + Np
                          + 9 * Cin * Cout + 9 * Cout * Cout + 6 * Cout
                          + B * Cout * Np)
    if has_proj:
        inputs += [params["sc_w"][:, :, 0, 0], *_fold_bn(params["sc_bn"])]
        in_specs += [
            pl.BlockSpec((Cout, Cin), lambda b: (0, 0)),
            pl.BlockSpec((Cout, 1), lambda b: (0, 0)),
            pl.BlockSpec((Cout, 1), lambda b: (0, 0)),
        ]
        flops += 2 * B * Np * Cout * Cin
        bytes_accessed += 4 * (Cin * Cout + 2 * Cout)
        kern = functools.partial(_kernel_proj, Wo=Wo)
    else:
        kern = functools.partial(_kernel_identity, Wo=Wo)

    out = pl.pallas_call(
        kern,
        out_shape=jax.ShapeDtypeStruct((B, Cout, Np), x_nchw.dtype),
        grid_spec=pltpu.PrefetchScalarGridSpec(
            num_scalar_prefetch=0,
            grid=(B,),
            in_specs=in_specs,
            out_specs=pl.BlockSpec((1, Cout, Np), lambda b: (b, 0, 0)),
            scratch_shapes=[pltpu.VMEM((9 * Cout, Np), jnp.float32)],
        ),
        compiler_params=pltpu.CompilerParams(
            dimension_semantics=("parallel",)),
        cost_estimate=pl.CostEstimate(flops=flops, transcendentals=0,
                                      bytes_accessed=bytes_accessed),
    )(*inputs)

    # Padded-flat (B, Cout, Np) -> crop the 1-px ring -> NCHW (no transpose).
    return out.reshape(B, Cout, Hp, Wp)[:, :, 1:-1, 1:-1]


# ----------------------------------------------------------------------------
# Deterministic parameter init (conv weights ~ nn.Conv2d default, eval-mode BN)
# ----------------------------------------------------------------------------
def init_params(key, cin, cout, stride):
    has_proj = (stride != 1) or (cin != cout)
    ks = jax.random.split(key, 6)

    def conv_w(k, co, ci, kh, kw):
        bound = 1.0 / ((ci * kh * kw) ** 0.5)
        return jax.random.uniform(k, (co, ci, kh, kw), jnp.float32, -bound, bound)

    def bn_p(k):
        k1, k2, k3, k4 = jax.random.split(k, 4)
        return {
            "gamma": jax.random.uniform(k1, (cout,), jnp.float32, 0.5, 1.5),
            "beta": 0.1 * jax.random.normal(k2, (cout,), jnp.float32),
            "mean": 0.1 * jax.random.normal(k3, (cout,), jnp.float32),
            "var": jax.random.uniform(k4, (cout,), jnp.float32, 0.5, 1.5),
        }

    params = {
        "conv1_w": conv_w(ks[0], cout, cin, 3, 3),
        "bn1": bn_p(ks[1]),
        "conv2_w": conv_w(ks[2], cout, cout, 3, 3),
        "bn2": bn_p(ks[3]),
    }
    if has_proj:
        params["sc_w"] = conv_w(ks[4], cout, cin, 1, 1)
        params["sc_bn"] = bn_p(ks[5])
    return params


# ----------------------------------------------------------------------------
# Pure-JAX reference (same folded / eval-mode BN semantics)
# ----------------------------------------------------------------------------
def reference_forward(x, params, stride, eps=1e-5):
    prec = jax.lax.Precision.HIGHEST

    def conv(v, w, s, pad):
        return jax.lax.conv_general_dilated(
            v, w, window_strides=(s, s), padding=pad,
            dimension_numbers=("NCHW", "OIHW", "NCHW"), precision=prec)

    def bn(v, p):
        scale = p["gamma"] / jnp.sqrt(p["var"] + eps)
        shift = p["beta"] - p["mean"] * scale
        return v * scale[None, :, None, None] + shift[None, :, None, None]

    out = jax.nn.relu(bn(conv(x, params["conv1_w"], stride, ((1, 1), (1, 1))),
                         params["bn1"]))
    out = bn(conv(out, params["conv2_w"], 1, ((1, 1), (1, 1))), params["bn2"])
    if "sc_w" in params:
        res = bn(conv(x, params["sc_w"], stride, ((0, 0), (0, 0))),
                 params["sc_bn"])
    else:
        res = x
    return jax.nn.relu(out + res)


if __name__ == "__main__":
    key = jax.random.PRNGKey(0)
    kx1, kx2, kp1, kp2 = jax.random.split(key, 4)

    # Config A: downsampling block — projection shortcut (stride 2, 4 -> 8 ch).
    xA = jax.random.normal(kx1, (2, 4, 16, 16), jnp.float32)
    pA = init_params(kp1, 4, 8, stride=2)
    outA = jax.block_until_ready(resnet_block_forward(xA, pA, stride=2))
    refA = reference_forward(xA, pA, stride=2)
    assert outA.shape == (2, 8, 8, 8)
    assert jnp.allclose(outA, refA, atol=2e-4, rtol=2e-4), \
        float(jnp.max(jnp.abs(outA - refA)))

    # Config B: identity shortcut (stride 1, 8 -> 8 ch).
    xB = jax.random.normal(kx2, (2, 8, 16, 16), jnp.float32)
    pB = init_params(kp2, 8, 8, stride=1)
    outB = jax.block_until_ready(resnet_block_forward(xB, pB, stride=1))
    refB = reference_forward(xB, pB, stride=1)
    assert outB.shape == (2, 8, 16, 16)
    assert jnp.allclose(outB, refB, atol=2e-4, rtol=2e-4), \
        float(jnp.max(jnp.abs(outB - refB)))

    print("KERNEL_OK")
</pallas_src>

<mosaic_0001>
module attributes {stable_mosaic.version = 11 : i64} {
  func.func @_kernel_proj(%arg0: i32, %arg1: memref<1x36x100xf32, #tpu.memory_space<vmem>>, %arg2: memref<1x4x100xf32, #tpu.memory_space<vmem>>, %arg3: memref<1x100xf32, #tpu.memory_space<vmem>>, %arg4: memref<8x36xf32, #tpu.memory_space<vmem>>, %arg5: memref<8x1xf32, #tpu.memory_space<vmem>>, %arg6: memref<8x1xf32, #tpu.memory_space<vmem>>, %arg7: memref<8x72xf32, #tpu.memory_space<vmem>>, %arg8: memref<8x1xf32, #tpu.memory_space<vmem>>, %arg9: memref<8x1xf32, #tpu.memory_space<vmem>>, %arg10: memref<8x4xf32, #tpu.memory_space<vmem>>, %arg11: memref<8x1xf32, #tpu.memory_space<vmem>>, %arg12: memref<8x1xf32, #tpu.memory_space<vmem>>, %arg13: memref<1x8x100xf32, #tpu.memory_space<vmem>>, %arg14: memref<72x100xf32, #tpu.memory_space<vmem>>) attributes {dimension_semantics = [#tpu.dimension_semantics<parallel>], iteration_bounds = array<i64: 2>, scalar_prefetch = 0 : i64, scratch_operands = 1 : i64, tpu.core_type = #tpu.core_type<tc>, window_params = [{transform_indices = @transform_0, window_bounds = array<i64: 1, 36, 100>}, {transform_indices = @transform_1, window_bounds = array<i64: 1, 4, 100>}, {pipeline_mode = #tpu.pipeline_mode<synchronous>, transform_indices = @transform_2, window_bounds = array<i64: 1, 100>}, {pipeline_mode = #tpu.pipeline_mode<synchronous>, transform_indices = @transform_3, window_bounds = array<i64: 8, 36>}, {pipeline_mode = #tpu.pipeline_mode<synchronous>, transform_indices = @transform_4, window_bounds = array<i64: 8, 1>}, {pipeline_mode = #tpu.pipeline_mode<synchronous>, transform_indices = @transform_5, window_bounds = array<i64: 8, 1>}, {pipeline_mode = #tpu.pipeline_mode<synchronous>, transform_indices = @transform_6, window_bounds = array<i64: 8, 72>}, {pipeline_mode = #tpu.pipeline_mode<synchronous>, transform_indices = @transform_7, window_bounds = array<i64: 8, 1>}, {pipeline_mode = #tpu.pipeline_mode<synchronous>, transform_indices = @transform_8, window_bounds = array<i64: 8, 1>}, {pipeline_mode = #tpu.pipeline_mode<synchronous>, transform_indices = @transform_9, window_bounds = array<i64: 8, 4>}, {pipeline_mode = #tpu.pipeline_mode<synchronous>, transform_indices = @transform_10, window_bounds = array<i64: 8, 1>}, {pipeline_mode = #tpu.pipeline_mode<synchronous>, transform_indices = @transform_11, window_bounds = array<i64: 8, 1>}, {transform_indices = @transform_12, window_bounds = array<i64: 1, 8, 100>}]} {
    %c0 = arith.constant 0 : index
    %c0_0 = arith.constant 0 : index
    %0 = vector.load %arg4[%c0, %c0_0] : memref<8x36xf32, #tpu.memory_space<vmem>>, vector<8x36xf32>
    %c0_1 = arith.constant 0 : index
    %c0_2 = arith.constant 0 : index
    %c0_3 = arith.constant 0 : index
    %1 = vector.load %arg1[%c0_1, %c0_2, %c0_3] : memref<1x36x100xf32, #tpu.memory_space<vmem>>, vector<1x36x100xf32>
    %2 = vector.shape_cast %1 : vector<1x36x100xf32> to vector<36x100xf32>
    %cst = arith.constant dense<0.000000e+00> : vector<8x100xf32>
    %3 = tpu.matmul %0, %2, %cst {dimension_numbers = #tpu.dot_dimension_numbers<[1], [0], [0], [1], [0, 0, 1, 1], [], []>} : vector<8x36xf32>, vector<36x100xf32>, vector<8x100xf32> -> vector<8x100xf32>
    %c0_4 = arith.constant 0 : index
    %c0_5 = arith.constant 0 : index
    %4 = vector.load %arg5[%c0_4, %c0_5] : memref<8x1xf32, #tpu.memory_space<vmem>>, vector<8x1xf32>
    %5 = vector.broadcast %4 : vector<8x1xf32> to vector<8x100xf32>
    %6 = arith.mulf %3, %5 : vector<8x100xf32>
    %c0_6 = arith.constant 0 : index
    %c0_7 = arith.constant 0 : index
    %7 = vector.load %arg6[%c0_6, %c0_7] : memref<8x1xf32, #tpu.memory_space<vmem>>, vector<8x1xf32>
    %8 = vector.broadcast %7 : vector<8x1xf32> to vector<8x100xf32>
    %9 = arith.addf %6, %8 : vector<8x100xf32>
    %cst_8 = arith.constant 0.000000e+00 : f32
    %10 = vector.broadcast %cst_8 : f32 to vector<8x100xf32>
    %11 = arith.maximumf %9, %10 : vector<8x100xf32>
    %c0_9 = arith.constant 0 : index
    %c0_10 = arith.constant 0 : index
    %12 = vector.load %arg3[%c0_9, %c0_10] : memref<1x100xf32, #tpu.memory_space<vmem>>, vector<1x100xf32>
    %13 = vector.broadcast %12 : vector<1x100xf32> to vector<8x100xf32>
    %14 = arith.mulf %11, %13 : vector<8x100xf32>
    %cst_11 = arith.constant 0.000000e+00 : f32
    %15 = vector.broadcast %cst_11 : f32 to vector<8x11xf32>
    %16 = tpu.concatenate %15, %14, %15 in 1 : vector<8x11xf32>, vector<8x100xf32>, vector<8x11xf32> -> vector<8x122xf32>
    %17 = vector.extract_strided_slice %16 {offsets = [0, 0], sizes = [8, 100], strides = [1, 1]} : vector<8x122xf32> to vector<8x100xf32>
    %c0_12 = arith.constant 0 : index
    %c0_13 = arith.constant 0 : index
    %18 = vector.load %arg14[%c0_12, %c0_13] : memref<72x100xf32, #tpu.memory_space<vmem>>, vector<8x100xf32>
    tpu.vector_store %arg14[%c0_12, %c0_13], %17 {strides = array<i32>} : memref<72x100xf32, #tpu.memory_space<vmem>>, vector<8x100xf32>,
    %19 = vector.extract_strided_slice %16 {offsets = [0, 1], sizes = [8, 100], strides = [1, 1]} : vector<8x122xf32> to vector<8x100xf32>
    %c8 = arith.constant 8 : index
    %c0_14 = arith.constant 0 : index
    %20 = vector.load %arg14[%c8, %c0_14] : memref<72x100xf32, #tpu.memory_space<vmem>>, vector<8x100xf32>
    tpu.vector_store %arg14[%c8, %c0_14], %19 {strides = array<i32>} : memref<72x100xf32, #tpu.memory_space<vmem>>, vector<8x100xf32>,
    %21 = vector.extract_strided_slice %16 {offsets = [0, 2], sizes = [8, 100], strides = [1, 1]} : vector<8x122xf32> to vector<8x100xf32>
    %c16 = arith.constant 16 : index
    %c0_15 = arith.constant 0 : index
    %22 = vector.load %arg14[%c16, %c0_15] : memref<72x100xf32, #tpu.memory_space<vmem>>, vector<8x100xf32>
    tpu.vector_store %arg14[%c16, %c0_15], %21 {strides = array<i32>} : memref<72x100xf32, #tpu.memory_space<vmem>>, vector<8x100xf32>,
    %23 = vector.extract_strided_slice %16 {offsets = [0, 10], sizes = [8, 100], strides = [1, 1]} : vector<8x122xf32> to vector<8x100xf32>
    %c24 = arith.constant 24 : index
    %c0_16 = arith.constant 0 : index
    %24 = vector.load %arg14[%c24, %c0_16] : memref<72x100xf32, #tpu.memory_space<vmem>>, vector<8x100xf32>
    tpu.vector_store %arg14[%c24, %c0_16], %23 {strides = array<i32>} : memref<72x100xf32, #tpu.memory_space<vmem>>, vector<8x100xf32>,
    %25 = vector.extract_strided_slice %16 {offsets = [0, 11], sizes = [8, 100], strides = [1, 1]} : vector<8x122xf32> to vector<8x100xf32>
    %c32 = arith.constant 32 : index
    %c0_17 = arith.constant 0 : index
    %26 = vector.load %arg14[%c32, %c0_17] : memref<72x100xf32, #tpu.memory_space<vmem>>, vector<8x100xf32>
    tpu.vector_store %arg14[%c32, %c0_17], %25 {strides = array<i32>} : memref<72x100xf32, #tpu.memory_space<vmem>>, vector<8x100xf32>,
    %27 = vector.extract_strided_slice %16 {offsets = [0, 12], sizes = [8, 100], strides = [1, 1]} : vector<8x122xf32> to vector<8x100xf32>
    %c40 = arith.constant 40 : index
    %c0_18 = arith.constant 0 : index
    %28 = vector.load %arg14[%c40, %c0_18] : memref<72x100xf32, #tpu.memory_space<vmem>>, vector<8x100xf32>
    tpu.vector_store %arg14[%c40, %c0_18], %27 {strides = array<i32>} : memref<72x100xf32, #tpu.memory_space<vmem>>, vector<8x100xf32>,
    %29 = vector.extract_strided_slice %16 {offsets = [0, 20], sizes = [8, 100], strides = [1, 1]} : vector<8x122xf32> to vector<8x100xf32>
    %c48 = arith.constant 48 : index
    %c0_19 = arith.constant 0 : index
    %30 = vector.load %arg14[%c48, %c0_19] : memref<72x100xf32, #tpu.memory_space<vmem>>, vector<8x100xf32>
    tpu.vector_store %arg14[%c48, %c0_19], %29 {strides = array<i32>} : memref<72x100xf32, #tpu.memory_space<vmem>>, vector<8x100xf32>,
    %31 = vector.extract_strided_slice %16 {offsets = [0, 21], sizes = [8, 100], strides = [1, 1]} : vector<8x122xf32> to vector<8x100xf32>
    %c56 = arith.constant 56 : index
    %c0_20 = arith.constant 0 : index
    %32 = vector.load %arg14[%c56, %c0_20] : memref<72x100xf32, #tpu.memory_space<vmem>>, vector<8x100xf32>
    tpu.vector_store %arg14[%c56, %c0_20], %31 {strides = array<i32>} : memref<72x100xf32, #tpu.memory_space<vmem>>, vector<8x100xf32>,
    %33 = vector.extract_strided_slice %16 {offsets = [0, 22], sizes = [8, 100], strides = [1, 1]} : vector<8x122xf32> to vector<8x100xf32>
    %c64 = arith.constant 64 : index
    %c0_21 = arith.constant 0 : index
    %34 = vector.load %arg14[%c64, %c0_21] : memref<72x100xf32, #tpu.memory_space<vmem>>, vector<8x100xf32>
    tpu.vector_store %arg14[%c64, %c0_21], %33 {strides = array<i32>} : memref<72x100xf32, #tpu.memory_space<vmem>>, vector<8x100xf32>,
    %c0_22 = arith.constant 0 : index
    %c0_23 = arith.constant 0 : index
    %35 = vector.load %arg7[%c0_22, %c0_23] : memref<8x72xf32, #tpu.memory_space<vmem>>, vector<8x72xf32>
    %c0_24 = arith.constant 0 : index
    %c0_25 = arith.constant 0 : index
    %36 = vector.load %arg14[%c0_24, %c0_25] : memref<72x100xf32, #tpu.memory_space<vmem>>, vector<72x100xf32>
    %cst_26 = arith.constant dense<0.000000e+00> : vector<8x100xf32>
    %37 = tpu.matmul %35, %36, %cst_26 {dimension_numbers = #tpu.dot_dimension_numbers<[1], [0], [0], [1], [0, 0, 1, 1], [], []>} : vector<8x72xf32>, vector<72x100xf32>, vector<8x100xf32> -> vector<8x100xf32>
    %c0_27 = arith.constant 0 : index
    %c0_28 = arith.constant 0 : index
    %38 = vector.load %arg8[%c0_27, %c0_28] : memref<8x1xf32, #tpu.memory_space<vmem>>, vector<8x1xf32>
    %39 = vector.broadcast %38 : vector<8x1xf32> to vector<8x100xf32>
    %40 = arith.mulf %37, %39 : vector<8x100xf32>
    %c0_29 = arith.constant 0 : index
    %c0_30 = arith.constant 0 : index
    %41 = vector.load %arg9[%c0_29, %c0_30] : memref<8x1xf32, #tpu.memory_space<vmem>>, vector<8x1xf32>
    %42 = vector.broadcast %41 : vector<8x1xf32> to vector<8x100xf32>
    %43 = arith.addf %40, %42 : vector<8x100xf32>
    %c0_31 = arith.constant 0 : index
    %c0_32 = arith.constant 0 : index
    %c0_33 = arith.constant 0 : index
    %44 = vector.load %arg2[%c0_31, %c0_32, %c0_33] : memref<1x4x100xf32, #tpu.memory_space<vmem>>, vector<1x4x100xf32>
    %45 = vector.shape_cast %44 : vector<1x4x100xf32> to vector<4x100xf32>
    %c0_34 = arith.constant 0 : index
    %c0_35 = arith.constant 0 : index
    %46 = vector.load %arg10[%c0_34, %c0_35] : memref<8x4xf32, #tpu.memory_space<vmem>>, vector<8x4xf32>
    %cst_36 = arith.constant dense<0.000000e+00> : vector<8x100xf32>
    %47 = tpu.matmul %46, %45, %cst_36 {dimension_numbers = #tpu.dot_dimension_numbers<[1], [0], [0], [1], [0, 0, 1, 1], [], []>} : vector<8x4xf32>, vector<4x100xf32>, vector<8x100xf32> -> vector<8x100xf32>
    %c0_37 = arith.constant 0 : index
    %c0_38 = arith.constant 0 : index
    %48 = vector.load %arg11[%c0_37, %c0_38] : memref<8x1xf32, #tpu.memory_space<vmem>>, vector<8x1xf32>
    %49 = vector.broadcast %48 : vector<8x1xf32> to vector<8x100xf32>
    %50 = arith.mulf %47, %49 : vector<8x100xf32>
    %c0_39 = arith.constant 0 : index
    %c0_40 = arith.constant 0 : index
    %51 = vector.load %arg12[%c0_39, %c0_40] : memref<8x1xf32, #tpu.memory_space<vmem>>, vector<8x1xf32>
    %52 = vector.broadcast %51 : vector<8x1xf32> to vector<8x100xf32>
    %53 = arith.addf %50, %52 : vector<8x100xf32>
    %54 = arith.addf %43, %53 : vector<8x100xf32>
    %cst_41 = arith.constant 0.000000e+00 : f32
    %55 = vector.broadcast %cst_41 : f32 to vector<8x100xf32>
    %56 = arith.maximumf %54, %55 : vector<8x100xf32>
    %c0_42 = arith.constant 0 : index
    %c0_43 = arith.constant 0 : index
    %c0_44 = arith.constant 0 : index
    %57 = vector.load %arg13[%c0_42, %c0_43, %c0_44] : memref<1x8x100xf32, #tpu.memory_space<vmem>>, vector<1x8x100xf32>
    %58 = vector.shape_cast %57 : vector<1x8x100xf32> to vector<8x100xf32>
    %59 = vector.shape_cast %56 : vector<8x100xf32> to vector<1x8x100xf32>
    tpu.vector_store %arg13[%c0_42, %c0_43, %c0_44], %59 {strides = array<i32>} : memref<1x8x100xf32, #tpu.memory_space<vmem>>, vector<1x8x100xf32>,
    return
  }
  func.func @transform_0(%arg0: i32) -> (i32, i32, i32) {
    %c0_i32 = arith.constant 0 : i32
    %c0_i32_0 = arith.constant 0 : i32
    %c0_i32_1 = arith.constant 0 : i32
    return %arg0, %c0_i32, %c0_i32_0 : i32, i32, i32
  }
  func.func @transform_1(%arg0: i32) -> (i32, i32, i32) {
    %c0_i32 = arith.constant 0 : i32
    %c0_i32_0 = arith.constant 0 : i32
    %c0_i32_1 = arith.constant 0 : i32
    return %arg0, %c0_i32, %c0_i32_0 : i32, i32, i32
  }
  func.func @transform_2(%arg0: i32) -> (i32, i32) {
    %c0_i32 = arith.constant 0 : i32
    %c0_i32_0 = arith.constant 0 : i32
    %c0_i32_1 = arith.constant 0 : i32
    return %c0_i32, %c0_i32_0 : i32, i32
  }
  func.func @transform_3(%arg0: i32) -> (i32, i32) {
    %c0_i32 = arith.constant 0 : i32
    %c0_i32_0 = arith.constant 0 : i32
    %c0_i32_1 = arith.constant 0 : i32
    return %c0_i32, %c0_i32_0 : i32, i32
  }
  func.func @transform_4(%arg0: i32) -> (i32, i32) {
    %c0_i32 = arith.constant 0 : i32
    %c0_i32_0 = arith.constant 0 : i32
    %c0_i32_1 = arith.constant 0 : i32
    return %c0_i32, %c0_i32_0 : i32, i32
  }
  func.func @transform_5(%arg0: i32) -> (i32, i32) {
    %c0_i32 = arith.constant 0 : i32
    %c0_i32_0 = arith.constant 0 : i32
    %c0_i32_1 = arith.constant 0 : i32
    return %c0_i32, %c0_i32_0 : i32, i32
  }
  func.func @transform_6(%arg0: i32) -> (i32, i32) {
    %c0_i32 = arith.constant 0 : i32
    %c0_i32_0 = arith.constant 0 : i32
    %c0_i32_1 = arith.constant 0 : i32
    return %c0_i32, %c0_i32_0 : i32, i32
  }
  func.func @transform_7(%arg0: i32) -> (i32, i32) {
    %c0_i32 = arith.constant 0 : i32
    %c0_i32_0 = arith.constant 0 : i32
    %c0_i32_1 = arith.constant 0 : i32
    return %c0_i32, %c0_i32_0 : i32, i32
  }
  func.func @transform_8(%arg0: i32) -> (i32, i32) {
    %c0_i32 = arith.constant 0 : i32
    %c0_i32_0 = arith.constant 0 : i32
    %c0_i32_1 = arith.constant 0 : i32
    return %c0_i32, %c0_i32_0 : i32, i32
  }
  func.func @transform_9(%arg0: i32) -> (i32, i32) {
    %c0_i32 = arith.constant 0 : i32
    %c0_i32_0 = arith.constant 0 : i32
    %c0_i32_1 = arith.constant 0 : i32
    return %c0_i32, %c0_i32_0 : i32, i32
  }
  func.func @transform_10(%arg0: i32) -> (i32, i32) {
    %c0_i32 = arith.constant 0 : i32
    %c0_i32_0 = arith.constant 0 : i32
    %c0_i32_1 = arith.constant 0 : i32
    return %c0_i32, %c0_i32_0 : i32, i32
  }
  func.func @transform_11(%arg0: i32) -> (i32, i32) {
    %c0_i32 = arith.constant 0 : i32
    %c0_i32_0 = arith.constant 0 : i32
    %c0_i32_1 = arith.constant 0 : i32
    return %c0_i32, %c0_i32_0 : i32, i32
  }
  func.func @transform_12(%arg0: i32) -> (i32, i32, i32) {
    %c0_i32 = arith.constant 0 : i32
    %c0_i32_0 = arith.constant 0 : i32
    %c0_i32_1 = arith.constant 0 : i32
    return %arg0, %c0_i32, %c0_i32_0 : i32, i32, i32
  }
}

</mosaic_0001>

<bundles_post_ra>
// kernel: tpu_custom_call.1
= control target key start
LH: loop header
LB: loop body
LE: loop exit
PB: predicated region body
PF: predicated region fallthrough
CT: control target
= control target key end

     0   :  { %s1050_s0 = inlined_call_operand.vmem [shape: f32[2,36,100], index: 0, kind: input, shape index: {}]   ;;  %s1051_s1 = inlined_call_operand.vmem [shape: f32[2,4,100], index: 1, kind: input, shape index: {}]   ;;  %s1052_s2 = inlined_call_operand.vmem [shape: f32[1,100], index: 2, kind: input, shape index: {}]   ;;  %s1053_s3 = inlined_call_operand.vmem [shape: f32[8,36], index: 3, kind: input, shape index: {}]   ;;  %s1054_s4 = inlined_call_operand.vmem [shape: f32[8,1], index: 4, kind: input, shape index: {}]   ;;  %s1055_s5 = inlined_call_operand.vmem [shape: f32[8,1], index: 5, kind: input, shape index: {}]   ;;  %s1056_s6 = inlined_call_operand.vmem [shape: f32[8,72], index: 6, kind: input, shape index: {}]   ;;  %s1057_s7 = inlined_call_operand.vmem [shape: f32[8,1], index: 7, kind: input, shape index: {}]   ;;  %s1058_s8 = inlined_call_operand.vmem [shape: f32[8,1], index: 8, kind: input, shape index: {}]   ;;  %s1059_s9 = inlined_call_operand.vmem [shape: f32[8,4], index: 9, kind: input, shape index: {}]   ;;  %s1060_s10 = inlined_call_operand.vmem [shape: f32[8,1], index: 10, kind: input, shape index: {}]   ;;  %s1061_s11 = inlined_call_operand.vmem [shape: f32[8,1], index: 11, kind: input, shape index: {}]   ;;  %s1062_s12 = inlined_call_operand.hbm [shape: f32[2,8,100], index: 12, kind: output, shape index: {}]  }
   0x1   :  { %1063 = sst [smem:[#allocation6_spill]] %s1050_s0 }
   0x2   :  { %1064 = sst [smem:[#allocation7_spill]] %s1051_s1 }
   0x3   :  { %17 = vsyncpa [#allocation4], 0 }
   0x4   :  { %19 = vsyncpa [#allocation4 + $0x1], 0  ;;  %s916_s21 = smov 0   ;;  %s918_s22 = smov 0  }
   0x5   :  { %s920_s23 = smov 0   ;;  %s922_s24 = smov 0  }
   0x6 LB: > { %s937_s25 = sadd.s32 4294967295, %s839_s24   ;;  %s707_s26 = sadd.s32 4294967294, %s839_s24   ;;  %s839_s24 = sphi %s922_s24, %s1072_s24   ;;  %s835_s23 = sphi %s920_s23, %s1071_s23   ;;  %s831_s22 = sphi %s918_s22, %s1070_s22   ;;  %s827_s21 = sphi %s916_s21, %s1069_s21  }
   0x7   : > { %s941_s27 = sadd.s32 1, %s839_s24   ;;  %s294_s28 = sadd.s32 1, %s835_s23 }
   0x8   : > { %s291_s29 = ssub.s32 %s839_s24, %s941_s27  ;;  %p304_p0 = scmp.ne.s32.totalorder %s835_s23, %s831_s22 }
   0x9   : > { %p292_p1 = scmp.eq.s32.totalorder %s291_s29, 0  ;;  %p305_p2 = scmp.eq.s32.totalorder %s937_s25, 1 }
   0xa   : > { %p310_p3 = scmp.ne.s32.totalorder %s831_s22, %s827_s21  ;;  %p311_p4 = scmp.eq.s32.totalorder %s707_s26, 1 }
   0xb   : > { %s952_s30 = scalar_select %p292_p1, %s835_s23, %s294_s28  }
   0xc   : > { %p954_p5 = por %p305_p2, %p304_p0  ;;  %p958_p6 = por %p311_p4, %p310_p3 }
   0xd   : > { %p710_p7 = scmp.ge.s32.totalorder %s839_s24, 1  ;;  %p374_p8 = scmp.lt.s32.totalorder %s839_s24, 3 }
   0xf   : > { %p375_p9 = pnand %p710_p7, %p374_p8 }
  0x10   : > { %p420_p10 = scmp.lt.s32.totalorder (!%p375_p9), %s937_s25, 1  ;;  %s1067_s0 = sld [smem:[#allocation6_spill]] (!%p375_p9) }
  0x11   : > { %378 = sbr.rel (%p375_p9) target bundleno = 568 (0x238), region = 68  ;;  %s842_s20 = smov (!%p375_p9), 11  }
  0x12   : > { %s1068_s1 = sld [smem:[#allocation7_spill]] (!%p375_p9)  ;;  %s845_s19 = smov (!%p375_p9), 106  }
  0x13   : > { %s850_s16 = smov (!%p375_p9), 127   ;;  %s417_s28 = sand.u32 (!%p375_p9), 1, %s831_s22  }
  0x14   : > { %s711_s29 = sshll.u32 (!%p375_p9), %s417_s28, 3 }
  0x16   : > { %v463_v0 = vld [vmem:[%s1054_s4] sm:$0xff]  ;;  %v841_v1 = vmov 0   ;;  %s969_s17 = scalar_select %p420_p10, %s937_s25, 1  ;;  %vm439_vm0 = vcmask 1043456   ;;  %vm435_vm1 = vcmask 293888   ;;  %vm576_vm2 = vcmask 31744  }
  0x17   : > { %773 = vset.pattern.permute.xlu0 %v841_v1  ;;  %774 = vset.pattern.permute.xlu2 %v841_v1  ;;  %v470_v4 = vld [vmem:[%s1055_s5] sm:$0xff]  ;;  %vm487_vm3 = vcmask 89088   ;;  %vm489_vm4 = vcmask 908288   ;;  %vm491_vm5 = vcmask 818176   ;;  %vm536_vm6 = vcmask 588800  }
  0x18   : > { %466 = vperm.xlu0 %773, %v463_v0   ;;  %775 = vset.pattern.permute.xlu1 %v841_v1  ;;  %s723_s18 = smul.u32 40, %s969_s17  ;;  %v429_v8 = vld [vmem:[%s1053_s3] sm:$0xff] }
  0x19   : > { %v776_v14 = vld [vmem:[%s1052_s2] ss:$0 sm:$0xff] }
  0x1a   : > { %s424_s26 = scalar_lea.vmem %s1067_s0, %s723_s18  ;;  %v575_v18 = vld [vmem:[%s1059_s9] sm:$0xff]  ;;  %s844_s18 = smov 107  }
  0x1b   : > { %v434_v2 = vld [vmem:[%s424_s26 + $0x20] sm:$0xf]  ;;  %v433_v3 = vld [vmem:[%s424_s26 + $0x18] sm:$0xff]  ;;  %v432_v5 = vld [vmem:[%s424_s26 + $0x10] sm:$0xff]  ;;  %s847_s0 = smov 108  }
  0x1c   : > { %714 = vmatpush.msk.msra.mxu0 %vm439_vm0, %v434_v2  ;;  %v431_v6 = vld [vmem:[%s424_s26 + $0x8] sm:$0xff]  ;;  %v430_v7 = vld [vmem:[%s424_s26] sm:$0xff]  ;;  %s713_s26 = sshll.u32 %s969_s17, 2  ;;  %s843_s17 = smov 116  }
  0x1d   : > { %s428_s15 = scalar_lea.vmem %s1068_s1, %s713_s26  ;;  %s848_s26 = smov 117   ;;  %v603_v22 = vld [vmem:[%s1060_s10] sm:$0xff] }
  0x1e   : > { %455 = vmatpush.msra.mxu0 %v433_v3  ;;  %v574_v17 = vld [vmem:[%s428_s15] sm:$0xf]  ;;  %s849_s15 = smov 118  }
  0x1f   : > { %717 = vmatpush.msk.msra.mxu2 %vm439_vm0, %v574_v17  ;;  %v560_v23 = vld [vmem:[%s1057_s7] sm:$0xff] }
  0x20   : > { %473 = vperm.xlu0 %773, %v470_v4   ;;  %456 = vmatpush.msra.mxu0 %v432_v5  ;;  %v610_v24 = vld [vmem:[%s1061_s11] sm:$0xff] }
  0x21   : > { %718 = vmatmul.msk.f32.vlgmr.msra.gmra.mxu2 %vm576_vm2, %v575_v18  ;;  %v567_v28 = vld [vmem:[%s1058_s8] sm:$0xff] }
  0x22   : > { %457 = vmatpush.msra.mxu0 %v431_v6  ;;  %v526_v42 = vld [vmem:[%s1056_s6] sm:$0xff] }
  0x24   : > { %458 = vmatpush.msra.mxu0 %v430_v7 }
  0x25   : > { %715 = vmatmul.msk.f32.vlgmr.msra.gmra.mxu0 %vm435_vm1, %v429_v8 }
  0x8a   : > { %v467_v9 = vpop.permute.xlu0 %466 }
  0x92   : > { %v474_v12 = vpop.permute.xlu0 %473 }
  0xa2   : > { %v460_v10 = vpop.f32.mrf.mxu0 }
  0xa3   : > { %v469_v11 = vmul.f32 %v467_v9, %v460_v10 }
  0xa4   : > { %v600_v45 = vpop.f32.mrf.mxu2 }
  0xa5   : > { %v476_v13 = vadd.f32 %v474_v12, %v469_v11 }
  0xa7   : > { %v477_v15 = vmax.f32 %v476_v13, 0.0 }
  0xa9   : > { %v482_v16 = vmul.f32 %v776_v14, %v477_v15 }
  0xab   : > { %484 = vrot.lane.b32.xlu1 %v482_v16, %s842_s20  ;;  %s846_s20 = smov 126  }
 0x11d   : > { %v485_v19 = vpop.permute.xlu1 %484 }
 0x11e   : > { %v488_v20 = vsel %vm487_vm3, 0.0, %v485_v19 }
 0x11f   : > { %v490_v21 = vsel %vm489_vm4, %v488_v20, 0.0 }
 0x120   : > { %492 = vst.msk [vmem:[#allocation2] sm:$0xff] %vm491_vm5, %v490_v21  ;;  %510 = vrot.lane.b32.xlu0 %v490_v21, %s843_s17  ;;  %518 = vrot.lane.b32.xlu2 %v490_v21, %s844_s18 }
 0x121   : > { %522 = vrot.lane.b32.xlu1 %v490_v21, %s845_s19  ;;  %s419_s19 = scalar_lea.vmem [#allocation3], %s711_s29  ;;  %s797_s29 = scalar_lea.hbm %s1062_s12, 16 }
 0x127   : > { %v527_v43 = vld [vmem:[#allocation2] sm:$0xff] }
 0x128   : > { %498 = vrot.lane.b32.xlu0 %v490_v21, %s846_s20  ;;  %514 = vrot.lane.b32.xlu2 %v490_v21, %s847_s0  ;;  %s633_s20 = sshll.u32 %s419_s19, 4  ;;  %s634_s20 = int_to_ptr.vmem [resolvable:$true] %s633_s20 }
 0x129   : > { %506 = vrot.lane.b32.xlu1 %v490_v21, %s848_s26 }
 0x130   : > { %606 = vperm.xlu0 %773, %v603_v22   ;;  %502 = vrot.lane.b32.xlu2 %v490_v21, %s849_s15  ;;  %s720_s15 = sshll.u32 %s937_s25, 3  ;;  %s621_s25 = scalar_lea.sflag [#allocation4], %s417_s28 }
 0x131   : > { %494 = vrot.lane.b32.xlu1 %v490_v21, %s850_s16  ;;  %s631_s18 = scalar_lea.hbm %s1062_s12, %s720_s15 }
 0x132   : > { %s635_s0 = sshll.u32 %s631_s18, 4  ;;  %s636_s0 = int_to_ptr.hbm [resolvable:$true] %s635_s0 }
 0x133   : > { %s791_s1 = sshra.s32 %s636_s0, 4  ;;  %s792_s1 = int_to_ptr.hbm [resolvable:$true] %s791_s1 }
 0x134   : > { %s793_s26 = scalar_lea.hbm %s792_s1, 8  ;;  %p798_p0 = scmp.lt.s32.totalorder %s792_s1, %s1062_s12 }
 0x135   : > { %p794_p11 = scmp.ne.s32.totalorder %s792_s1, %s793_s26  ;;  %p799_p1 = scmp.lt.s32.totalorder %s797_s29, %s793_s26 }
 0x137   : > { %p795_p12 = pnand %p794_p11, %p954_p5  ;;  %p800_p2 = por %p799_p1, %p798_p0 }
 0x138   : > { %563 = vperm.xlu2 %774, %v560_v23  }
 0x139   : > { %570 = vperm.xlu1 %775, %v567_v28   ;;  %p796_p13 = pneg %p795_p12 }
 0x13b   : > { %p801_p3 = pnand %p800_p2, %p796_p13 }
 0x140   : > { %613 = vperm.xlu2 %774, %v610_v24  }
 0x17a   : > { %v519_v25 = vpop.permute.xlu2 %518 }
 0x17b   : > { %521 = vst.msk [vmem:[#allocation2 + $0x38] sm:$0xff] %vm491_vm5, %v519_v25 }
 0x182   : > { %v515_v26 = vpop.permute.xlu2 %514  ;;  %v534_v34 = vld [vmem:[#allocation2 + $0x38] sm:$0xff] }
 0x183   : > { %517 = vst.msk [vmem:[#allocation2 + $0x30] sm:$0xff] %vm491_vm5, %v515_v26 }
 0x18a   : > { %v503_v27 = vpop.permute.xlu2 %502  ;;  %v533_v35 = vld [vmem:[#allocation2 + $0x30] sm:$0xff] }
 0x18b   : > { %505 = vst.msk [vmem:[#allocation2 + $0x18] sm:$0xff] %vm491_vm5, %v503_v27 }
 0x192   : > { %v511_v29 = vpop.permute.xlu0 %510  ;;  %v530_v39 = vld [vmem:[#allocation2 + $0x18] sm:$0xff]  ;;  %v564_v44 = vpop.permute.xlu2 %563 }
 0x193   : > { %513 = vst.msk [vmem:[#allocation2 + $0x28] sm:$0xff] %vm491_vm5, %v511_v29  ;;  %v523_v30 = vpop.permute.xlu1 %522 }
 0x194   : > { %525 = vst.msk [vmem:[#allocation2 + $0x40] sm:$0xff] %vm491_vm5, %v523_v30 }
 0x19a   : > { %v499_v31 = vpop.permute.xlu0 %498  ;;  %v532_v36 = vld [vmem:[#allocation2 + $0x28] sm:$0xff]  ;;  %v614_v48 = vpop.permute.xlu2 %613 }
 0x19b   : > { %501 = vst.msk [vmem:[#allocation2 + $0x10] sm:$0xff] %vm491_vm5, %v499_v31  ;;  %v507_v32 = vpop.permute.xlu1 %506  ;;  %v535_v33 = vld [vmem:[#allocation2 + $0x40] sm:$0xff] }
 0x19c   : > { %509 = vst.msk [vmem:[#allocation2 + $0x20] sm:$0xff] %vm491_vm5, %v507_v32  ;;  %547 = vmatpush.msra.mxu1 %v535_v33 }
 0x19e   : > { %548 = vmatpush.msra.mxu1 %v534_v34 }
 0x1a0   : > { %549 = vmatpush.msra.mxu1 %v533_v35 }
 0x1a2   : > { %550 = vmatpush.msra.mxu1 %v532_v36  ;;  %v529_v40 = vld [vmem:[#allocation2 + $0x10] sm:$0xff]  ;;  %v607_v46 = vpop.permute.xlu0 %606 }
 0x1a3   : > { %v495_v37 = vpop.permute.xlu1 %494  ;;  %v531_v38 = vld [vmem:[#allocation2 + $0x20] sm:$0xff]  ;;  %v609_v47 = vmul.f32 %v607_v46, %v600_v45 }
 0x1a4   : > { %497 = vst.msk [vmem:[#allocation2 + $0x8] sm:$0xff] %vm491_vm5, %v495_v37  ;;  %551 = vmatpush.msra.mxu1 %v531_v38 }
 0x1a5   : > { %v616_v52 = vadd.f32 %v614_v48, %v609_v47 }
 0x1a6   : > { %552 = vmatpush.msra.mxu1 %v530_v39 }
 0x1a8   : > { %553 = vmatpush.msra.mxu1 %v529_v40 }
 0x1ab   : > { %v528_v41 = vld [vmem:[#allocation2 + $0x8] sm:$0xff]  ;;  %v571_v50 = vpop.permute.xlu1 %570 }
 0x1ac   : > { %554 = vmatpush.msra.mxu1 %v528_v41 }
 0x1ae   : > { %555 = vmatpush.msra.mxu1 %v527_v43 }
 0x1af   : > { %716 = vmatmul.msk.f32.vlgmr.msra.gmra.mxu1 %vm536_vm6, %v526_v42 }
 0x22c   : > { %v557_v49 = vpop.f32.mrf.mxu1 }
 0x22d   : > { %v566_v51 = vmul.f32 %v564_v44, %v557_v49 }
 0x22f   : > { %v573_v53 = vadd.f32 %v571_v50, %v566_v51 }
 0x231   : > { %v617_v54 = vadd.f32 %v616_v52, %v573_v53 }
 0x233   : > { %v618_v55 = vmax.f32 %v617_v54, 0.0 }
 0x235   : > { %619 = vst.msk [vmem:[%s419_s19] sm:$0xff] %vm491_vm5, %v618_v55 }
 0x236   : > { %804 = shalt.err (!%p801_p3)
}
 0x237   : > { %724 = dma.vmem_to_hbm [thread:$0]  (%p954_p5), %s634_s20, 128, %s636_s0, %s621_s25  }
 0x238 PF: > { %p730_p4 = scmp.ge.s32.totalorder %s839_s24, 2  ;;  %s647_s28 = sand.u32 1, %s827_s21  }
 0x239   : > { %s648_s19 = scalar_lea.sflag [#allocation4], %s647_s28 }
 0x23a   : > { %p727_p7 = pnand %p730_p4, %p958_p6 }
 0x23c   : > { %p728_p8 = pneg %p727_p7 }
 0x23e   : > { %822 = dma.done.wait (%p728_p8), %s648_s19, 128  }
 0x23f   : > { %824 = vsyncadd (%p728_p8), %s648_s19, 4294967168  ;;  %p22_p9 = scmp.ge.s32.totalorder %s941_s27, 4   ;;  %s1069_s21 = smov %s831_s22 }
 0x240   : > { %s1070_s22 = smov %s835_s23  ;;  %s1071_s23 = smov %s952_s30 }
 0x241   : > { %s1072_s24 = smov %s941_s27  ;;  %24 = sbr.rel (!%p22_p9) target bundleno = 6 (0x6), region = 106 }
 0x246   :  { %654 = vsyncpa [#allocation4], 1 }
 0x247   :  { %656 = vsyncpa [#allocation4 + $0x1], 1 }

</bundles_post_ra>
